<compile_context>
chip_gen: v5e
topology: v5e:2x2
jax: 0.10.0
libtpu: 0.0.40
codegen_flags: <defaults>
</compile_context>

<pallas_src>
import functools

import jax
import jax.numpy as jnp
import numpy as np
from jax.experimental import pallas as pl
from jax.experimental.pallas import tpu as pltpu


# ----------------------------------------------------------------------------
# Pallas kernel: one (head-group, batch-tile) per grid step.
# ----------------------------------------------------------------------------
def _msa_kernel(*refs, block_b, nq, nk, nh_max, d, has_mask):
    if has_mask:
        (q_ref, k_ref, m_ref,
         wq_ref, bq_ref, wkv_ref, bkv_ref, wo_ref, bo_ref,
         out_ref) = refs
    else:
        (q_ref, k_ref,
         wq_ref, bq_ref, wkv_ref, bkv_ref, wo_ref, bo_ref,
         out_ref) = refs

    sd = nh_max * d
    # Batch-flattened operands for the projections (bigger M on the MXU).
    q_in = q_ref[0].reshape(block_b * nq, sd)          # (bb*nq, sd) bf16
    k_in = k_ref[0].reshape(block_b * nk, sd)          # (bb*nk, sd) bf16

    # Group-wide projections (scale already folded into wq / bq).
    qp = (jnp.dot(q_in, wq_ref[0], preferred_element_type=jnp.float32)
          + bq_ref[0]).astype(jnp.bfloat16)            # (bb*nq, sd)
    kvp = (jnp.dot(k_in, wkv_ref[0], preferred_element_type=jnp.float32)
           + bkv_ref[0]).astype(jnp.bfloat16)          # (bb*nk, 2*sd)

    if has_mask:
        # nonzero mask entry == masked key -> additive -100.0 bias (torch).
        bias = jnp.where(m_ref[0] != 0, -100.0, 0.0).astype(jnp.float32)
        bias = bias[:, None, :]                        # (bb, 1, nk)

    wo = wo_ref[0]                                     # (sd, sd) bf16
    acc = jnp.zeros((block_b * nq, sd), jnp.float32)   # lane-dense accumulator
    for h in range(nh_max):                            # static unroll, small
        c0, c1 = h * d, (h + 1) * d
        q3 = qp[:, c0:c1].reshape(block_b, nq, d)
        k3 = kvp[:, c0:c1].reshape(block_b, nk, d)
        v3 = kvp[:, sd + c0:sd + c1].reshape(block_b, nk, d)

        # QK^T: contract the last dims of both operands (no explicit .T).
        attn = jnp.einsum("bqd,bkd->bqk", q3, k3,
                          preferred_element_type=jnp.float32)      # (bb, nq, nk)
        if has_mask:
            attn = attn + bias
            attn = attn - jnp.max(attn, axis=-1, keepdims=True)
            p = jnp.exp(attn)
            p = p * pl.reciprocal(jnp.sum(p, axis=-1, keepdims=True), approx=True)
        else:
            # Faithful to the PyTorch module: no softmax when key_masks is None.
            p = attn

        xh = jnp.einsum("bqk,bkd->bqd", p.astype(jnp.bfloat16), v3,
                        preferred_element_type=jnp.float32)        # (bb, nq, d)

        # Out-projection, accumulated per head:
        #   x @ Wo == sum_h x_h @ Wo[h*d:(h+1)*d, :]   (no lane concat)
        acc = acc + jnp.dot(xh.reshape(block_b * nq, d).astype(jnp.bfloat16),
                            wo[c0:c1, :], preferred_element_type=jnp.float32)

    out = acc + bo_ref[0]                                          # + (1, sd)
    out_ref[0] = out.reshape(block_b, nq, sd).astype(out_ref.dtype)


# ----------------------------------------------------------------------------
# One-time parameter restructuring: scale folding + zero padding of smaller
# groups up to sd_max (phantom heads contribute exactly 0).
# ----------------------------------------------------------------------------
def _prepare_params(params, num_heads, per_head_dim):
    d = per_head_dim
    nh_max = max(num_heads)
    sd_max = nh_max * d
    scale = d ** (-0.5)

    wq_g, bq_g, wkv_g, bkv_g, wo_g, bo_g = ([] for _ in range(6))
    for g, nh in enumerate(num_heads):
        sd = nh * d
        p = params[g]
        pad = sd_max - sd
        wq = jnp.pad(p["wq"] * scale, ((0, pad), (0, pad)))        # fold scale
        bq = jnp.pad(p["bq"].reshape(sd) * scale, (0, pad))
        wk = jnp.pad(p["wkv"][:, :sd], ((0, pad), (0, pad)))
        wv = jnp.pad(p["wkv"][:, sd:], ((0, pad), (0, pad)))
        bkv = p["bkv"].reshape(2 * sd)
        bk = jnp.pad(bkv[:sd], (0, pad))
        bv = jnp.pad(bkv[sd:], (0, pad))
        wo = jnp.pad(p["wo"], ((0, pad), (0, pad)))
        bo = jnp.pad(p["bo"].reshape(sd), (0, pad))
        wq_g.append(wq)
        bq_g.append(bq)
        wkv_g.append(jnp.concatenate([wk, wv], axis=1))            # (sd_max, 2*sd_max)
        bkv_g.append(jnp.concatenate([bk, bv]))
        wo_g.append(wo)
        bo_g.append(bo)

    bf16 = lambda x: x.astype(jnp.bfloat16)
    return {
        "wq": bf16(jnp.stack(wq_g)),                               # (ng, sd, sd)
        "bq": jnp.stack(bq_g)[:, None, :].astype(jnp.float32),     # (ng, 1, sd)
        "wkv": bf16(jnp.stack(wkv_g)),                             # (ng, sd, 2sd)
        "bkv": jnp.stack(bkv_g)[:, None, :].astype(jnp.float32),   # (ng, 1, 2sd)
        "wo": bf16(jnp.stack(wo_g)),                               # (ng, sd, sd)
        "bo": jnp.stack(bo_g)[:, None, :].astype(jnp.float32),     # (ng, 1, sd)
    }


# ----------------------------------------------------------------------------
# Module wrapper.
# ----------------------------------------------------------------------------
def mixed_scale_attention(params, query, keys, *, num_heads, per_head_dim,
                          batch_first=False, key_masks=None, query_mask=None):
    if not batch_first:
        query = jnp.transpose(query, (1, 0, 2))      # (b, nq, E)
        keys = jnp.transpose(keys, (1, 0, 2))        # (b, tot_nk, E)
    b, nq, _ = query.shape
    _, tot_nk, _ = keys.shape
    ng = len(num_heads)
    nk = tot_nk // ng
    d = per_head_dim
    nh_max = max(num_heads)
    sd_max = nh_max * d

    # Gather each group's channel slice (zero-padded to sd_max) and stack.
    q_groups, k_groups = [], []
    start = 0
    for g, nh in enumerate(num_heads):
        sd = nh * d
        qg = query[:, :, start:start + sd]
        kg = keys[:, g * nk:(g + 1) * nk, start:start + sd]
        if sd < sd_max:
            qg = jnp.pad(qg, ((0, 0), (0, 0), (0, sd_max - sd)))
            kg = jnp.pad(kg, ((0, 0), (0, 0), (0, sd_max - sd)))
        q_groups.append(qg)
        k_groups.append(kg)
        start += sd
    q_all = jnp.stack(q_groups, axis=0).astype(jnp.bfloat16)   # (ng, b, nq, sd)
    k_all = jnp.stack(k_groups, axis=0).astype(jnp.bfloat16)   # (ng, b, nk, sd)
    wts = _prepare_params(params, num_heads, d)

    has_mask = key_masks is not None

    # One grid step per (group, batch tile); the toy batch fits one tile.
    # TODO(synk): for production sizes add nq (and flash-style nk) tiling and
    #             set vmem_limit_bytes — v7x only has 64 MiB VMEM per core.
    block_b = b
    num_b_tiles = pl.cdiv(b, block_b)

    inputs = [q_all, k_all]
    in_specs = [
        pl.BlockSpec((1, block_b, nq, sd_max), lambda g, i: (g, i, 0, 0)),
        pl.BlockSpec((1, block_b, nk, sd_max), lambda g, i: (g, i, 0, 0)),
    ]
    if has_mask:
        mask_all = (key_masks.astype(jnp.int32)
                    .reshape(b, ng, nk).transpose(1, 0, 2))        # (ng, b, nk)
        inputs.append(mask_all)
        in_specs.append(pl.BlockSpec((1, block_b, nk), lambda g, i: (g, i, 0)))

    inputs += [wts["wq"], wts["bq"], wts["wkv"], wts["bkv"],
               wts["wo"], wts["bo"]]
    in_specs += [
        pl.BlockSpec((1, sd_max, sd_max), lambda g, i: (g, 0, 0)),       # wq
        pl.BlockSpec((1, 1, sd_max), lambda g, i: (g, 0, 0)),            # bq
        pl.BlockSpec((1, sd_max, 2 * sd_max), lambda g, i: (g, 0, 0)),   # wkv
        pl.BlockSpec((1, 1, 2 * sd_max), lambda g, i: (g, 0, 0)),        # bkv
        pl.BlockSpec((1, sd_max, sd_max), lambda g, i: (g, 0, 0)),       # wo
        pl.BlockSpec((1, 1, sd_max), lambda g, i: (g, 0, 0)),            # bo
    ]

    kernel = functools.partial(_msa_kernel, block_b=block_b, nq=nq, nk=nk,
                               nh_max=nh_max, d=d, has_mask=has_mask)
    out = pl.pallas_call(
        kernel,
        out_shape=jax.ShapeDtypeStruct((ng, b, nq, sd_max), jnp.float32),
        grid=(ng, num_b_tiles),
        in_specs=in_specs,
        out_specs=pl.BlockSpec((1, block_b, nq, sd_max), lambda g, i: (g, i, 0, 0)),
        compiler_params=pltpu.CompilerParams(
            dimension_semantics=("parallel", "parallel")),
    )(*inputs)

    # Combine groups along channels (matches torch.cat(..., dim=-1)).
    if all(nh == nh_max for nh in num_heads):
        feats = jnp.transpose(out, (1, 2, 0, 3)).reshape(b, nq, ng * sd_max)
    else:
        feats = jnp.concatenate(
            [out[g, :, :, :nh * d] for g, nh in enumerate(num_heads)], axis=-1)

    if query_mask is not None:
        feats = feats * (~query_mask).astype(feats.dtype)[..., None]
    if not batch_first:
        feats = jnp.transpose(feats, (1, 0, 2))                    # (nq, b, E)
    return feats


# ----------------------------------------------------------------------------
# Pure-JAX reference (mirrors the PyTorch forward) for a correctness check.
# ----------------------------------------------------------------------------
def reference(params, query, keys, *, num_heads, per_head_dim,
              batch_first=False, key_masks=None, query_mask=None):
    if not batch_first:
        query = jnp.transpose(query, (1, 0, 2))
        keys = jnp.transpose(keys, (1, 0, 2))
    b, nq, _ = query.shape
    _, tot_nk, _ = keys.shape
    ng = len(num_heads)
    nk = tot_nk // ng
    scale = per_head_dim ** (-0.5)
    feats = []
    start_c = 0
    for i, nh in enumerate(num_heads):
        sd = nh * per_head_dim
        end_c = start_c + sd
        p = params[i]
        q = query[:, :, start_c:end_c] @ p["wq"] + p["bq"][0]
        q = q.reshape(b, nq, nh, per_head_dim).transpose(0, 2, 1, 3) * scale
        kv = keys[:, i * nk:(i + 1) * nk, start_c:end_c] @ p["wkv"] + p["bkv"][0]
        kv = kv.reshape(b, nk, 2, nh, per_head_dim).transpose(2, 0, 3, 1, 4)
        k, v = kv[0], kv[1]
        attn = q @ jnp.swapaxes(k, -2, -1)
        if key_masks is not None:
            km = key_masks[:, i * nk:(i + 1) * nk]
            bias = jnp.where(km != 0, -100.0, 0.0)[:, None, None, :]
            attn = jax.nn.softmax(attn + bias, axis=-1)
        x = (attn @ v).transpose(0, 2, 1, 3).reshape(b, nq, sd)
        x = x @ p["wo"] + p["bo"][0]
        feats.append(x)
        start_c = end_c
    feats = jnp.concatenate(feats, axis=-1)
    if query_mask is not None:
        feats = feats * (~query_mask).astype(feats.dtype)[..., None]
    if not batch_first:
        feats = jnp.transpose(feats, (1, 0, 2))
    return feats


def init_params(key, num_heads, per_head_dim):
    params = []
    for i, nh in enumerate(num_heads):
        sd = nh * per_head_dim
        ks = jax.random.split(jax.random.fold_in(key, i), 6)
        params.append({
            "wq": 0.1 * jax.random.normal(ks[0], (sd, sd), jnp.float32),
            "bq": 0.1 * jax.random.normal(ks[1], (1, sd), jnp.float32),
            "wkv": 0.1 * jax.random.normal(ks[2], (sd, 2 * sd), jnp.float32),
            "bkv": 0.1 * jax.random.normal(ks[3], (1, 2 * sd), jnp.float32),
            "wo": 0.1 * jax.random.normal(ks[4], (sd, sd), jnp.float32),
            "bo": 0.1 * jax.random.normal(ks[5], (1, sd), jnp.float32),
        })
    return params


if __name__ == "__main__":
    # Module config: embed_dim=32, num_heads=[2, 2] -> per_head_dim=8,
    # scale_dims=[16, 16].  Small synthetic shapes.
    embed_dim = 32
    num_heads = (2, 2)
    per_head_dim = embed_dim // sum(num_heads)

    b, nq, nk_per_group = 2, 8, 8
    tot_nk = nk_per_group * len(num_heads)

    root = jax.random.PRNGKey(0)
    kq, kk, kkm, kqm, kp = jax.random.split(root, 5)

    # batch_first=False (PyTorch default): (seq, batch, channel)
    query = jax.random.normal(kq, (nq, b, embed_dim), jnp.float32)
    keys = jax.random.normal(kk, (tot_nk, b, embed_dim), jnp.float32)
    key_masks = jax.random.bernoulli(kkm, 0.25, (b, tot_nk))     # True = masked
    query_mask = jax.random.bernoulli(kqm, 0.25, (b, nq))        # True = masked

    params = init_params(kp, num_heads, per_head_dim)

    fwd = jax.jit(functools.partial(
        mixed_scale_attention, num_heads=num_heads,
        per_head_dim=per_head_dim, batch_first=False))

    # Masked path (mask bias + softmax, as in the PyTorch module).
    out = jax.block_until_ready(
        fwd(params, query, keys, key_masks=key_masks, query_mask=query_mask))
    ref = reference(params, query, keys, num_heads=num_heads,
                    per_head_dim=per_head_dim, batch_first=False,
                    key_masks=key_masks, query_mask=query_mask)
    np.testing.assert_allclose(np.asarray(out), np.asarray(ref),
                               rtol=2e-2, atol=2e-2)
    assert out.shape == (nq, b, embed_dim)

    # No-mask path (no softmax -- faithful to the reference module).
    out_nm = jax.block_until_ready(fwd(params, query, keys))
    ref_nm = reference(params, query, keys, num_heads=num_heads,
                       per_head_dim=per_head_dim, batch_first=False)
    np.testing.assert_allclose(np.asarray(out_nm), np.asarray(ref_nm),
                               rtol=2e-2, atol=2e-2)

    print("KERNEL_OK")
</pallas_src>

<mosaic_0001>
module attributes {stable_mosaic.version = 11 : i64} {
  func.func @_msa_kernel(%arg0: i32, %arg1: i32, %arg2: memref<1x2x8x16xbf16, #tpu.memory_space<vmem>>, %arg3: memref<1x2x8x16xbf16, #tpu.memory_space<vmem>>, %arg4: memref<1x2x8xi32, #tpu.memory_space<vmem>>, %arg5: memref<1x16x16xbf16, #tpu.memory_space<vmem>>, %arg6: memref<1x1x16xf32, #tpu.memory_space<vmem>>, %arg7: memref<1x16x32xbf16, #tpu.memory_space<vmem>>, %arg8: memref<1x1x32xf32, #tpu.memory_space<vmem>>, %arg9: memref<1x16x16xbf16, #tpu.memory_space<vmem>>, %arg10: memref<1x1x16xf32, #tpu.memory_space<vmem>>, %arg11: memref<1x2x8x16xf32, #tpu.memory_space<vmem>>) attributes {dimension_semantics = [#tpu.dimension_semantics<parallel>, #tpu.dimension_semantics<parallel>], iteration_bounds = array<i64: 2, 1>, scalar_prefetch = 0 : i64, scratch_operands = 0 : i64, tpu.core_type = #tpu.core_type<tc>, window_params = [{transform_indices = @transform_0, window_bounds = array<i64: 1, 2, 8, 16>}, {transform_indices = @transform_1, window_bounds = array<i64: 1, 2, 8, 16>}, {transform_indices = @transform_2, window_bounds = array<i64: 1, 2, 8>}, {transform_indices = @transform_3, window_bounds = array<i64: 1, 16, 16>}, {transform_indices = @transform_4, window_bounds = array<i64: 1, 1, 16>}, {transform_indices = @transform_5, window_bounds = array<i64: 1, 16, 32>}, {transform_indices = @transform_6, window_bounds = array<i64: 1, 1, 32>}, {transform_indices = @transform_7, window_bounds = array<i64: 1, 16, 16>}, {transform_indices = @transform_8, window_bounds = array<i64: 1, 1, 16>}, {transform_indices = @transform_9, window_bounds = array<i64: 1, 2, 8, 16>}]} {
    %c0 = arith.constant 0 : index
    %c0_0 = arith.constant 0 : index
    %c0_1 = arith.constant 0 : index
    %c0_2 = arith.constant 0 : index
    %0 = vector.load %arg2[%c0, %c0_0, %c0_1, %c0_2] : memref<1x2x8x16xbf16, #tpu.memory_space<vmem>>, vector<1x2x8x16xbf16>
    %1 = vector.shape_cast %0 : vector<1x2x8x16xbf16> to vector<2x8x16xbf16>
    %2 = vector.shape_cast %1 : vector<2x8x16xbf16> to vector<16x16xbf16>
    %c0_3 = arith.constant 0 : index
    %c0_4 = arith.constant 0 : index
    %c0_5 = arith.constant 0 : index
    %c0_6 = arith.constant 0 : index
    %3 = vector.load %arg3[%c0_3, %c0_4, %c0_5, %c0_6] : memref<1x2x8x16xbf16, #tpu.memory_space<vmem>>, vector<1x2x8x16xbf16>
    %4 = vector.shape_cast %3 : vector<1x2x8x16xbf16> to vector<2x8x16xbf16>
    %5 = vector.shape_cast %4 : vector<2x8x16xbf16> to vector<16x16xbf16>
    %c0_7 = arith.constant 0 : index
    %c0_8 = arith.constant 0 : index
    %c0_9 = arith.constant 0 : index
    %6 = vector.load %arg5[%c0_7, %c0_8, %c0_9] : memref<1x16x16xbf16, #tpu.memory_space<vmem>>, vector<1x16x16xbf16>
    %7 = vector.shape_cast %6 : vector<1x16x16xbf16> to vector<16x16xbf16>
    %cst = arith.constant dense<0.000000e+00> : vector<16x16xf32>
    %8 = tpu.matmul %2, %7, %cst {dimension_numbers = #tpu.dot_dimension_numbers<[1], [0], [0], [1], [0, 0, 1, 1], [], []>} : vector<16x16xbf16>, vector<16x16xbf16>, vector<16x16xf32> -> vector<16x16xf32>
    %c0_10 = arith.constant 0 : index
    %c0_11 = arith.constant 0 : index
    %c0_12 = arith.constant 0 : index
    %9 = vector.load %arg6[%c0_10, %c0_11, %c0_12] : memref<1x1x16xf32, #tpu.memory_space<vmem>>, vector<1x1x16xf32>
    %10 = vector.shape_cast %9 : vector<1x1x16xf32> to vector<1x16xf32>
    %11 = vector.broadcast %10 : vector<1x16xf32> to vector<16x16xf32>
    %12 = arith.addf %8, %11 : vector<16x16xf32>
    %13 = arith.truncf %12 : vector<16x16xf32> to vector<16x16xbf16>
    %c0_13 = arith.constant 0 : index
    %c0_14 = arith.constant 0 : index
    %c0_15 = arith.constant 0 : index
    %14 = vector.load %arg7[%c0_13, %c0_14, %c0_15] : memref<1x16x32xbf16, #tpu.memory_space<vmem>>, vector<1x16x32xbf16>
    %15 = vector.shape_cast %14 : vector<1x16x32xbf16> to vector<16x32xbf16>
    %cst_16 = arith.constant dense<0.000000e+00> : vector<16x32xf32>
    %16 = tpu.matmul %5, %15, %cst_16 {dimension_numbers = #tpu.dot_dimension_numbers<[1], [0], [0], [1], [0, 0, 1, 1], [], []>} : vector<16x16xbf16>, vector<16x32xbf16>, vector<16x32xf32> -> vector<16x32xf32>
    %c0_17 = arith.constant 0 : index
    %c0_18 = arith.constant 0 : index
    %c0_19 = arith.constant 0 : index
    %17 = vector.load %arg8[%c0_17, %c0_18, %c0_19] : memref<1x1x32xf32, #tpu.memory_space<vmem>>, vector<1x1x32xf32>
    %18 = vector.shape_cast %17 : vector<1x1x32xf32> to vector<1x32xf32>
    %19 = vector.broadcast %18 : vector<1x32xf32> to vector<16x32xf32>
    %20 = arith.addf %16, %19 : vector<16x32xf32>
    %21 = arith.truncf %20 : vector<16x32xf32> to vector<16x32xbf16>
    %c0_20 = arith.constant 0 : index
    %c0_21 = arith.constant 0 : index
    %c0_22 = arith.constant 0 : index
    %22 = vector.load %arg4[%c0_20, %c0_21, %c0_22] : memref<1x2x8xi32, #tpu.memory_space<vmem>>, vector<1x2x8xi32>
    %23 = vector.shape_cast %22 : vector<1x2x8xi32> to vector<2x8xi32>
    %c0_i32 = arith.constant 0 : i32
    %24 = vector.broadcast %c0_i32 : i32 to vector<2x8xi32>
    %25 = arith.cmpi ne, %23, %24 : vector<2x8xi32>
    %cst_23 = arith.constant -1.000000e+02 : f32
    %cst_24 = arith.constant 0.000000e+00 : f32
    %26 = vector.broadcast %cst_23 : f32 to vector<2x8xf32>
    %27 = vector.broadcast %cst_24 : f32 to vector<2x8xf32>
    %28 = arith.select %25, %26, %27 : vector<2x8xi1>, vector<2x8xf32>
    %29 = vector.shape_cast %28 : vector<2x8xf32> to vector<2x1x8xf32>
    %c0_25 = arith.constant 0 : index
    %c0_26 = arith.constant 0 : index
    %c0_27 = arith.constant 0 : index
    %30 = vector.load %arg9[%c0_25, %c0_26, %c0_27] : memref<1x16x16xbf16, #tpu.memory_space<vmem>>, vector<1x16x16xbf16>
    %31 = vector.shape_cast %30 : vector<1x16x16xbf16> to vector<16x16xbf16>
    %cst_28 = arith.constant 0.000000e+00 : f32
    %32 = vector.broadcast %cst_28 : f32 to vector<16x16xf32>
    %33 = vector.extract_strided_slice %13 {offsets = [0, 0], sizes = [16, 8], strides = [1, 1]} : vector<16x16xbf16> to vector<16x8xbf16>
    %34 = vector.shape_cast %33 : vector<16x8xbf16> to vector<2x8x8xbf16>
    %35 = vector.extract_strided_slice %21 {offsets = [0, 0], sizes = [16, 8], strides = [1, 1]} : vector<16x32xbf16> to vector<16x8xbf16>
    %36 = vector.shape_cast %35 : vector<16x8xbf16> to vector<2x8x8xbf16>
    %37 = vector.extract_strided_slice %21 {offsets = [0, 16], sizes = [16, 8], strides = [1, 1]} : vector<16x32xbf16> to vector<16x8xbf16>
    %38 = vector.shape_cast %37 : vector<16x8xbf16> to vector<2x8x8xbf16>
    "tpu.trace_start"() <{level = 10 : i32, message = "bqd,bkd->bqk"}> : () -> ()
    %cst_29 = arith.constant dense<0.000000e+00> : vector<2x8x8xf32>
    %39 = tpu.matmul %34, %36, %cst_29 {dimension_numbers = #tpu.dot_dimension_numbers<[2], [2], [1], [1], [0, 0, 0, 1, 1, 1], [0], [0]>} : vector<2x8x8xbf16>, vector<2x8x8xbf16>, vector<2x8x8xf32> -> vector<2x8x8xf32>
    "tpu.trace_stop"() : () -> ()
    %40 = vector.broadcast %29 : vector<2x1x8xf32> to vector<2x8x8xf32>
    %41 = arith.addf %39, %40 : vector<2x8x8xf32>
    %cst_30 = arith.constant dense<0xFF800000> : vector<2x8xf32>
    %42 = vector.multi_reduction <maximumf>, %41, %cst_30 [2] : vector<2x8x8xf32> to vector<2x8xf32>
    %43 = vector.shape_cast %42 : vector<2x8xf32> to vector<2x8x1xf32>
    %44 = vector.broadcast %43 : vector<2x8x1xf32> to vector<2x8x8xf32>
    %45 = arith.subf %41, %44 : vector<2x8x8xf32>
    %46 = math.exp %45 : vector<2x8x8xf32>
    %cst_31 = arith.constant dense<0.000000e+00> : vector<2x8xf32>
    %47 = vector.multi_reduction <add>, %46, %cst_31 [2] : vector<2x8x8xf32> to vector<2x8xf32>
    %48 = vector.shape_cast %47 : vector<2x8xf32> to vector<2x8x1xf32>
    %49 = tpu.reciprocal %48 {approx = true} : vector<2x8x1xf32> -> vector<2x8x1xf32>
    %50 = vector.broadcast %49 : vector<2x8x1xf32> to vector<2x8x8xf32>
    %51 = arith.mulf %46, %50 : vector<2x8x8xf32>
    %52 = arith.truncf %51 : vector<2x8x8xf32> to vector<2x8x8xbf16>
    "tpu.trace_start"() <{level = 10 : i32, message = "bqk,bkd->bqd"}> : () -> ()
    %cst_32 = arith.constant dense<0.000000e+00> : vector<2x8x8xf32>
    %53 = tpu.matmul %52, %38, %cst_32 {dimension_numbers = #tpu.dot_dimension_numbers<[2], [1], [1], [2], [0, 0, 0, 1, 1, 2], [0], [0]>} : vector<2x8x8xbf16>, vector<2x8x8xbf16>, vector<2x8x8xf32> -> vector<2x8x8xf32>
    "tpu.trace_stop"() : () -> ()
    %54 = vector.shape_cast %53 : vector<2x8x8xf32> to vector<16x8xf32>
    %55 = arith.truncf %54 : vector<16x8xf32> to vector<16x8xbf16>
    %56 = vector.extract_strided_slice %31 {offsets = [0, 0], sizes = [8, 16], strides = [1, 1]} : vector<16x16xbf16> to vector<8x16xbf16>
    %cst_33 = arith.constant dense<0.000000e+00> : vector<16x16xf32>
    %57 = tpu.matmul %55, %56, %cst_33 {dimension_numbers = #tpu.dot_dimension_numbers<[1], [0], [0], [1], [0, 0, 1, 1], [], []>} : vector<16x8xbf16>, vector<8x16xbf16>, vector<16x16xf32> -> vector<16x16xf32>
    %58 = arith.addf %32, %57 : vector<16x16xf32>
    %59 = vector.extract_strided_slice %13 {offsets = [0, 8], sizes = [16, 8], strides = [1, 1]} : vector<16x16xbf16> to vector<16x8xbf16>
    %60 = vector.shape_cast %59 : vector<16x8xbf16> to vector<2x8x8xbf16>
    %61 = vector.extract_strided_slice %21 {offsets = [0, 8], sizes = [16, 8], strides = [1, 1]} : vector<16x32xbf16> to vector<16x8xbf16>
    %62 = vector.shape_cast %61 : vector<16x8xbf16> to vector<2x8x8xbf16>
    %63 = vector.extract_strided_slice %21 {offsets = [0, 24], sizes = [16, 8], strides = [1, 1]} : vector<16x32xbf16> to vector<16x8xbf16>
    %64 = vector.shape_cast %63 : vector<16x8xbf16> to vector<2x8x8xbf16>
    "tpu.trace_start"() <{level = 10 : i32, message = "bqd,bkd->bqk"}> : () -> ()
    %cst_34 = arith.constant dense<0.000000e+00> : vector<2x8x8xf32>
    %65 = tpu.matmul %60, %62, %cst_34 {dimension_numbers = #tpu.dot_dimension_numbers<[2], [2], [1], [1], [0, 0, 0, 1, 1, 1], [0], [0]>} : vector<2x8x8xbf16>, vector<2x8x8xbf16>, vector<2x8x8xf32> -> vector<2x8x8xf32>
    "tpu.trace_stop"() : () -> ()
    %66 = vector.broadcast %29 : vector<2x1x8xf32> to vector<2x8x8xf32>
    %67 = arith.addf %65, %66 : vector<2x8x8xf32>
    %cst_35 = arith.constant dense<0xFF800000> : vector<2x8xf32>
    %68 = vector.multi_reduction <maximumf>, %67, %cst_35 [2] : vector<2x8x8xf32> to vector<2x8xf32>
    %69 = vector.shape_cast %68 : vector<2x8xf32> to vector<2x8x1xf32>
    %70 = vector.broadcast %69 : vector<2x8x1xf32> to vector<2x8x8xf32>
    %71 = arith.subf %67, %70 : vector<2x8x8xf32>
    %72 = math.exp %71 : vector<2x8x8xf32>
    %cst_36 = arith.constant dense<0.000000e+00> : vector<2x8xf32>
    %73 = vector.multi_reduction <add>, %72, %cst_36 [2] : vector<2x8x8xf32> to vector<2x8xf32>
    %74 = vector.shape_cast %73 : vector<2x8xf32> to vector<2x8x1xf32>
    %75 = tpu.reciprocal %74 {approx = true} : vector<2x8x1xf32> -> vector<2x8x1xf32>
    %76 = vector.broadcast %75 : vector<2x8x1xf32> to vector<2x8x8xf32>
    %77 = arith.mulf %72, %76 : vector<2x8x8xf32>
    %78 = arith.truncf %77 : vector<2x8x8xf32> to vector<2x8x8xbf16>
    "tpu.trace_start"() <{level = 10 : i32, message = "bqk,bkd->bqd"}> : () -> ()
    %cst_37 = arith.constant dense<0.000000e+00> : vector<2x8x8xf32>
    %79 = tpu.matmul %78, %64, %cst_37 {dimension_numbers = #tpu.dot_dimension_numbers<[2], [1], [1], [2], [0, 0, 0, 1, 1, 2], [0], [0]>} : vector<2x8x8xbf16>, vector<2x8x8xbf16>, vector<2x8x8xf32> -> vector<2x8x8xf32>
    "tpu.trace_stop"() : () -> ()
    %80 = vector.shape_cast %79 : vector<2x8x8xf32> to vector<16x8xf32>
    %81 = arith.truncf %80 : vector<16x8xf32> to vector<16x8xbf16>
    %82 = vector.extract_strided_slice %31 {offsets = [8, 0], sizes = [8, 16], strides = [1, 1]} : vector<16x16xbf16> to vector<8x16xbf16>
    %cst_38 = arith.constant dense<0.000000e+00> : vector<16x16xf32>
    %83 = tpu.matmul %81, %82, %cst_38 {dimension_numbers = #tpu.dot_dimension_numbers<[1], [0], [0], [1], [0, 0, 1, 1], [], []>} : vector<16x8xbf16>, vector<8x16xbf16>, vector<16x16xf32> -> vector<16x16xf32>
    %84 = arith.addf %58, %83 : vector<16x16xf32>
    %c0_39 = arith.constant 0 : index
    %c0_40 = arith.constant 0 : index
    %c0_41 = arith.constant 0 : index
    %85 = vector.load %arg10[%c0_39, %c0_40, %c0_41] : memref<1x1x16xf32, #tpu.memory_space<vmem>>, vector<1x1x16xf32>
    %86 = vector.shape_cast %85 : vector<1x1x16xf32> to vector<1x16xf32>
    %87 = vector.broadcast %86 : vector<1x16xf32> to vector<16x16xf32>
    %88 = arith.addf %84, %87 : vector<16x16xf32>
    %89 = vector.shape_cast %88 : vector<16x16xf32> to vector<2x8x16xf32>
    %c0_42 = arith.constant 0 : index
    %c0_43 = arith.constant 0 : index
    %c0_44 = arith.constant 0 : index
    %c0_45 = arith.constant 0 : index
    %90 = vector.load %arg11[%c0_42, %c0_43, %c0_44, %c0_45] : memref<1x2x8x16xf32, #tpu.memory_space<vmem>>, vector<1x2x8x16xf32>
    %91 = vector.shape_cast %90 : vector<1x2x8x16xf32> to vector<2x8x16xf32>
    %92 = vector.shape_cast %89 : vector<2x8x16xf32> to vector<1x2x8x16xf32>
    tpu.vector_store %arg11[%c0_42, %c0_43, %c0_44, %c0_45], %92 {strides = array<i32>} : memref<1x2x8x16xf32, #tpu.memory_space<vmem>>, vector<1x2x8x16xf32>,
    return
  }
  func.func @transform_0(%arg0: i32, %arg1: i32) -> (i32, i32, i32, i32) {
    %c0_i32 = arith.constant 0 : i32
    %c0_i32_0 = arith.constant 0 : i32
    %c0_i32_1 = arith.constant 0 : i32
    return %arg0, %arg1, %c0_i32, %c0_i32_0 : i32, i32, i32, i32
  }
  func.func @transform_1(%arg0: i32, %arg1: i32) -> (i32, i32, i32, i32) {
    %c0_i32 = arith.constant 0 : i32
    %c0_i32_0 = arith.constant 0 : i32
    %c0_i32_1 = arith.constant 0 : i32
    return %arg0, %arg1, %c0_i32, %c0_i32_0 : i32, i32, i32, i32
  }
  func.func @transform_2(%arg0: i32, %arg1: i32) -> (i32, i32, i32) {
    %c0_i32 = arith.constant 0 : i32
    %c0_i32_0 = arith.constant 0 : i32
    return %arg0, %arg1, %c0_i32 : i32, i32, i32
  }
  func.func @transform_3(%arg0: i32, %arg1: i32) -> (i32, i32, i32) {
    %c0_i32 = arith.constant 0 : i32
    %c0_i32_0 = arith.constant 0 : i32
    %c0_i32_1 = arith.constant 0 : i32
    return %arg0, %c0_i32, %c0_i32_0 : i32, i32, i32
  }
  func.func @transform_4(%arg0: i32, %arg1: i32) -> (i32, i32, i32) {
    %c0_i32 = arith.constant 0 : i32
    %c0_i32_0 = arith.constant 0 : i32
    %c0_i32_1 = arith.constant 0 : i32
    return %arg0, %c0_i32, %c0_i32_0 : i32, i32, i32
  }
  func.func @transform_5(%arg0: i32, %arg1: i32) -> (i32, i32, i32) {
    %c0_i32 = arith.constant 0 : i32
    %c0_i32_0 = arith.constant 0 : i32
    %c0_i32_1 = arith.constant 0 : i32
    return %arg0, %c0_i32, %c0_i32_0 : i32, i32, i32
  }
  func.func @transform_6(%arg0: i32, %arg1: i32) -> (i32, i32, i32) {
    %c0_i32 = arith.constant 0 : i32
    %c0_i32_0 = arith.constant 0 : i32
    %c0_i32_1 = arith.constant 0 : i32
    return %arg0, %c0_i32, %c0_i32_0 : i32, i32, i32
  }
  func.func @transform_7(%arg0: i32, %arg1: i32) -> (i32, i32, i32) {
    %c0_i32 = arith.constant 0 : i32
    %c0_i32_0 = arith.constant 0 : i32
    %c0_i32_1 = arith.constant 0 : i32
    return %arg0, %c0_i32, %c0_i32_0 : i32, i32, i32
  }
  func.func @transform_8(%arg0: i32, %arg1: i32) -> (i32, i32, i32) {
    %c0_i32 = arith.constant 0 : i32
    %c0_i32_0 = arith.constant 0 : i32
    %c0_i32_1 = arith.constant 0 : i32
    return %arg0, %c0_i32, %c0_i32_0 : i32, i32, i32
  }
  func.func @transform_9(%arg0: i32, %arg1: i32) -> (i32, i32, i32, i32) {
    %c0_i32 = arith.constant 0 : i32
    %c0_i32_0 = arith.constant 0 : i32
    %c0_i32_1 = arith.constant 0 : i32
    return %arg0, %arg1, %c0_i32, %c0_i32_0 : i32, i32, i32, i32
  }
}

</mosaic_0001>

<bundles_post_ra>
// kernel: mixed_scale_attention.1
= control target key start
LH: loop header
LB: loop body
LE: loop exit
PB: predicated region body
PF: predicated region fallthrough
CT: control target
= control target key end

     0   :  { %s1273_s30 = smov 0   ;;  %s1275_s10 = smov 0   ;;  %s1389_s0 = inlined_call_operand.vmem [shape: bf16[2,2,8,16], index: 0, kind: input, shape index: {}]   ;;  %s1390_s1 = inlined_call_operand.vmem [shape: bf16[2,2,8,16], index: 1, kind: input, shape index: {}]   ;;  %s1391_s2 = inlined_call_operand.vmem [shape: s32[2,2,8], index: 2, kind: input, shape index: {}]   ;;  %s1392_s3 = inlined_call_operand.vmem [shape: bf16[2,16,16], index: 3, kind: input, shape index: {}]   ;;  %s1393_s4 = inlined_call_operand.vmem [shape: f32[2,1,16], index: 4, kind: input, shape index: {}]   ;;  %s1394_s5 = inlined_call_operand.vmem [shape: bf16[2,16,32], index: 5, kind: input, shape index: {}]   ;;  %s1395_s6 = inlined_call_operand.vmem [shape: f32[2,1,32], index: 6, kind: input, shape index: {}]   ;;  %s1396_s7 = inlined_call_operand.vmem [shape: bf16[2,16,16], index: 7, kind: input, shape index: {}]   ;;  %s1397_s8 = inlined_call_operand.vmem [shape: f32[2,1,16], index: 8, kind: input, shape index: {}]   ;;  %s1398_s9 = inlined_call_operand.vmem [shape: f32[2,2,8,16], index: 9, kind: output, shape index: {}]  }
   0x1   :  { %s1277_s11 = smov 0  }
   0x2 LB: > { %s31_s12 = sadd.s32 1, %s1213_s10  ;;  %p1094_p0 = scmp.ge.s32.totalorder %s1217_s11, 1  ;;  %s1217_s11 = sphi %s1277_s11, %s19_s11   ;;  %s1213_s10 = sphi %s1275_s10, %s1400_s10   ;;  %s1209_s30 = sphi %s1273_s30, %s1399_s30  }
   0x3   : > { %p33_p1 = scmp.ge.s32.totalorder %s31_s12, 2  ;;  %p393_p2 = scmp.lt.s32.totalorder %s1217_s11, 3 }
   0x5   : > { %s1402_s12 = smov (%p33_p1, %s31_s12), 0  ;;  %p394_p3 = pnand %p1094_p0, %p393_p2 }
   0x6   : > { %p478_p4 = scmp.lt.s32.totalorder (!%p394_p3), %s1209_s30, 1  ;;  %s1221_s21 = smov (!%p394_p3), 112  }
   0x7   : > { %397 = sbr.rel (%p394_p3) target bundleno = 952 (0x3b8), region = 56 }
   0xc   : > { %s1404_s30 = smov (!%p478_p4, %s1209_s30), 1  ;;  %vm560_vm0 = vcmask 130048   ;;  %vm627_vm1 = vcmask 64512   ;;  %v1220_v34 = vmov 0.0   ;;  %vm698_vm3 = vcmask 1043456  }
   0xd   : > { %s1294_s13 = sshll.u32 %s1404_s30, 3  ;;  %s511_s16 = scalar_lea.vmem %s1393_s4, %s1404_s30 }
   0xe   : > { %s508_s19 = scalar_lea.vmem %s1392_s3, %s1294_s13  ;;  %s516_s22 = scalar_lea.vmem %s1394_s5, %s1294_s13  ;;  %v1176_v4 = vld [vmem:[%s511_s16] ss:$0 sm:$0xff] }
   0xf   : > { %v1146_v0 = vld [vmem:[%s508_s19] sm:$0xff]  ;;  %s485_s25 = scalar_lea.vmem %s1389_s0, %s1294_s13  ;;  %s495_s28 = scalar_lea.vmem %s1390_s1, %s1294_s13 }
  0x10   : > { %v1147_v1 = vld [vmem:[%s516_s22] sm:$0xff]  ;;  %s519_s15 = scalar_lea.vmem %s1395_s6, %s1404_s30  ;;  %571 = vmatpush.bf16.msra.mxu0 %v1146_v0  ;;  %s1219_s16 = smov 120  }
  0x11   : > { %v1144_v2 = vld [vmem:[%s485_s25] sm:$0xff]  ;;  %607 = vmatpush.bf16.msra.mxu1 %v1147_v1  ;;  %s1099_s17 = sshll.u32 %s1404_s30, 1  ;;  %s1222_s22 = smov 104  }
  0x12   : > { %v1145_v3 = vld [vmem:[%s495_s28] sm:$0xff]  ;;  %s503_s20 = scalar_lea.vmem %s1391_s2, %s1099_s17  ;;  %s524_s25 = scalar_lea.vmem %s1396_s7, %s1294_s13 }
  0x13   : > { %1116 = vmatmul.msk.bf16.vlgmr.msra.gmra.mxu0 %vm560_vm0, %v1144_v2  ;;  %v1177_v5 = vld [vmem:[%s519_s15] ss:$0 sm:$0xff]  ;;  %s527_s27 = scalar_lea.vmem %s1397_s8, %s1404_s30  ;;  %s1143_s28 = sshll.u32 %s1404_s30, 4 }
  0x14   : > { %1125 = vmatmul.msk.bf16.vlgmr.msra.gmra.mxu1 %vm560_vm0, %v1145_v3  ;;  %v616_v33 = vld [vmem:[%s503_s20] sm:$0x3]  ;;  %s536_s15 = scalar_lea.vmem %s1398_s9, %s1143_s28 }
  0x15   : > { %vm617_vm2 = vcmp.ne.s32.totalorder %v616_v33, 0 }
  0x16   : > { %v618_v35 = vsel %vm617_vm2, -100.0, %v1220_v34 }
  0x17   : > { %v623_v37 = vperm.slane %v618_v35, 0  ;;  %v620_v40 = vrot.slane %v618_v35, 1 }
  0x19   : > { %v624_v42 = vperm.slane %v620_v40, 0 }
  0x90   : > { %v573_v6 = vpop.f32.mrf.mxu0 }
  0x91   : > { %v609_v7 = vpop.f32.mrf.mxu1  ;;  %v574_v8 = vadd.f32 %v1176_v4, %v573_v6 }
  0x92   : > { %v610_v9 = vadd.f32 %v1177_v5, %v609_v7 }
  0x93   : > { %v578_v10 = vpack.c.bf16 %v574_v8, %v574_v8 }
  0x94   : > { %v614_v11 = vpack.c.bf16 %v610_v9, %v610_v9 }
  0x95   : > { %v741_v14 = vunpack.c.l.b16 %v578_v10 }
  0x96   : > { %v691_v12 = vunpack.c.l.b16 %v614_v11  ;;  %v632_v13 = vsel %vm627_vm1, %v614_v11, 0 }
  0x97   : > { %641 = vmatpush.bf16.xpose.msra.mxu2 %v632_v13  ;;  %v742_v16 = vpack.c.b16 %v741_v14, %v741_v14 }
  0x98   : > { %v1323_v15 = vpack.c.b16 %v691_v12, %v691_v12  ;;  %v575_v17 = vpop.f32.mrf.mxu0 }
  0x99   : > { %v611_v18 = vpop.f32.mrf.mxu1  ;;  %v576_v19 = vadd.f32 %v1176_v4, %v575_v17  ;;  %743 = vrot.lane.b32.xlu1 %v742_v16, %s1219_s16 }
  0x9a   : > { %v612_v20 = vadd.f32 %v1177_v5, %v611_v18  ;;  %745 = vrot.lane.b32.xlu0 %v1323_v15, %s1219_s16 }
  0x9b   : > { %v579_v21 = vpack.c.bf16 %v576_v19, %v576_v19 }
  0x9c   : > { %v615_v22 = vpack.c.bf16 %v612_v20, %v612_v20 }
  0x9d   : > { %v767_v23 = vunpack.c.l.b16 %v579_v21 }
  0x9e   : > { %v716_v24 = vunpack.c.l.b16 %v615_v22  ;;  %1126 = vmatmul.msk.bf16.vlgmr.msra.gmra.mxu2 %vm627_vm1, %v578_v10  ;;  %v651_v25 = vsel %vm627_vm1, %v615_v22, 0 }
  0x9f   : > { %660 = vmatpush.bf16.xpose.msra.mxu3 %v651_v25  ;;  %v768_v26 = vpack.c.b16 %v767_v23, %v767_v23 }
  0xa0   : > { %v1328_v27 = vpack.c.b16 %v716_v24, %v716_v24 }
  0xa1   : > { %769 = vrot.lane.b32.xlu1 %v768_v26, %s1219_s16  ;;  %v621_v26 = vld [vmem:[%s524_s25] sm:$0xf] }
  0xa2   : > { %771 = vrot.lane.b32.xlu0 %v1328_v27, %s1219_s16 }
  0xa6   : > { %1127 = vmatmul.msk.bf16.vlgmr.msra.gmra.mxu3 %vm627_vm1, %v579_v21 }
 0x10b   : > { %v744_v30 = vpop.permute.xlu1 %743 }
 0x10c   : > { %v746_v28 = vpop.permute.xlu0 %745 }
 0x10d   : > { %v751_v29 = vsel %vm627_vm1, %v746_v28, 0  ;;  %v883_v28 = vsel %vm698_vm3, %v621_v26, 0 }
 0x10e   : > { %760 = vmatpush.bf16.xpose.msrb.mxu2 %v751_v29 }
 0x113   : > { %v770_v36 = vpop.permute.xlu1 %769 }
 0x114   : > { %v772_v31 = vpop.permute.xlu0 %771 }
 0x115   : > { %1130 = vmatmul.msk.bf16.vlgmr.msrb.gmra.mxu2 %vm627_vm1, %v744_v30  ;;  %v777_v32 = vsel %vm627_vm1, %v772_v31, 0 }
 0x116   : > { %786 = vmatpush.bf16.xpose.msrb.mxu3 %v777_v32 }
 0x11d   : > { %1131 = vmatmul.msk.bf16.vlgmr.msrb.gmra.mxu3 %vm627_vm1, %v770_v36 }
 0x11e   : > { %892 = vmatpush.bf16.msra.mxu3 %v883_v28 }
 0x121   : > { %v643_v38 = vpop.f32.mrf.mxu2 }
 0x122   : > { %v644_v39 = vadd.f32 %v643_v38, %v623_v37 }
 0x124   : > { %v666_v41 = vsel %vm627_vm1, %v644_v39, -inf }
 0x125   : > { %667 = vmax.xlane.f32.xlu2 %v666_v41 }
 0x129   : > { %v645_v43 = vpop.f32.mrf.mxu2  ;;  %v662_v44 = vpop.f32.mrf.mxu3 }
 0x12a   : > { %v663_v45 = vadd.f32 %v662_v44, %v624_v42  ;;  %v622_v43 = vld [vmem:[%s524_s25 + $0x4] sm:$0xf] }
 0x12b   : > { %v863_v44 = vsel %vm698_vm3, %v622_v43, 0 }
 0x12c   : > { %v669_v46 = vsel %vm627_vm1, %v663_v45, -inf  ;;  %872 = vmatpush.bf16.msra.mxu2 %v863_v44 }
 0x12d   : > { %670 = vmax.xlane.f32.xlu2 %v669_v46 }
 0x131   : > { %v664_v47 = vpop.f32.mrf.mxu3 }
 0x145   : > { %693 = vrot.lane.b32.xlu2 %v1323_v15, %s1221_s21 }
 0x14d   : > { %718 = vrot.lane.b32.xlu2 %v1328_v27, %s1221_s21 }
 0x198   : > { %v762_v48 = vpop.f32.mrf.mxu2  ;;  %v668_v49 = vpop.xlane.xlu2 %667 }
 0x199   : > { %v763_v50 = vadd.f32 %v762_v48, %v623_v37  ;;  %v672_v51 = vsub.f32 %v644_v39, %v668_v49 }
 0x19b   : > { %v674_v52 = vmul.f32 1.442695, %v672_v51  ;;  %v792_v53 = vsel %vm627_vm1, %v763_v50, -inf  ;;  %v1178_v51 = vld [vmem:[%s527_s27] ss:$0 sm:$0xff] }
 0x19c   : > { %793 = vmax.xlane.f32.xlu0 %v792_v53 }
 0x19d   : > { %1179 = vpow2.f32 %v674_v52 }
 0x1a0   : > { %v764_v54 = vpop.f32.mrf.mxu2  ;;  %v788_v55 = vpop.f32.mrf.mxu3 }
 0x1a1   : > { %v789_v56 = vadd.f32 %v788_v55, %v624_v42  ;;  %v671_v57 = vpop.xlane.xlu2 %670 }
 0x1a2   : > { %v673_v58 = vsub.f32 %v663_v45, %v671_v57 }
 0x1a3   : > { %v1180_v59 = vpop.eup %1179  ;;  %v795_v60 = vsel %vm627_vm1, %v789_v56, -inf }
 0x1a4   : > { %v676_v61 = vmul.f32 1.442695, %v673_v58  ;;  %796 = vmax.xlane.f32.xlu1 %v795_v60  ;;  %v678_v62 = vsel %vm627_vm1, %v1180_v59, 0.0 }
 0x1a5   : > { %679 = vadd.xlane.f32.xlu2 %v678_v62 }
 0x1a6   : > { %1181 = vpow2.f32 %v676_v61 }
 0x1a8   : > { %v790_v63 = vpop.f32.mrf.mxu3 }
 0x1a9   : > { %v694_v0 = vpop.permute.xlu2 %693 }
 0x1aa   : > { %v700_v1 = vsel %vm698_vm3, %v694_v0, 0 }
 0x1ab   : > { %709 = vmatpush.bf16.msrb.mxu0 %v700_v1 }
 0x1ac   : > { %v1182_v2 = vpop.eup %1181 }
 0x1ad   : > { %v681_v3 = vsel %vm627_vm1, %v1182_v2, 0.0 }
 0x1ae   : > { %682 = vadd.xlane.f32.xlu2 %v681_v3 }
 0x1b1   : > { %v719_v4 = vpop.permute.xlu2 %718 }
 0x1b2   : > { %v724_v5 = vsel %vm698_vm3, %v719_v4, 0 }
 0x1b3   : > { %733 = vmatpush.bf16.msrb.mxu1 %v724_v5 }
 0x1c6   : > { %816 = vrot.lane.b32.xlu2 %v1323_v15, %s1222_s22 }
 0x20f   : > { %v794_v6 = vpop.xlane.xlu0 %793 }
 0x210   : > { %v798_v7 = vsub.f32 %v763_v50, %v794_v6 }
 0x212   : > { %v800_v8 = vmul.f32 1.442695, %v798_v7 }
 0x214   : > { %1183 = vpow2.f32 %v800_v8 }
 0x217   : > { %v797_v9 = vpop.xlane.xlu1 %796 }
 0x218   : > { %v799_v10 = vsub.f32 %v789_v56, %v797_v9  ;;  %v680_v11 = vpop.xlane.xlu2 %679 }
 0x219   : > { %1185 = vrcp.f32 %v680_v11 }
 0x21a   : > { %v1184_v12 = vpop.eup %1183  ;;  %v802_v13 = vmul.f32 1.442695, %v799_v10 }
 0x21b   : > { %v804_v14 = vsel %vm627_vm1, %v1184_v12, 0.0 }
 0x21c   : > { %1187 = vpow2.f32 %v802_v13  ;;  %805 = vadd.xlane.f32.xlu0 %v804_v14 }
 0x21f   : > { %v1186_v16 = vpop.eup %1185 }
 0x220   : > { %v686_v17 = vmul.f32 %v1186_v16, %v1180_v59 }
 0x221   : > { %v683_v18 = vpop.xlane.xlu2 %682 }
 0x222   : > { %v1188_v19 = vpop.eup %1187  ;;  %1189 = vrcp.f32 %v683_v18  ;;  %v688_v15 = vpack.c.bf16 %v686_v17, %v686_v17 }
 0x223   : > { %v807_v20 = vsel %vm627_vm1, %v1188_v19, 0.0 }
 0x224   : > { %808 = vadd.xlane.f32.xlu1 %v807_v20  ;;  %1128 = vmatmul.msk.bf16.vlgmr.msrb.gmra.mxu0 %vm627_vm1, %v688_v15 }
 0x228   : > { %v1190_v21 = vpop.eup %1189 }
 0x229   : > { %v687_v22 = vmul.f32 %v1190_v21, %v1182_v2  ;;  %v817_v23 = vpop.permute.xlu2 %816 }
 0x22a   : > { %v822_v24 = vsel %vm698_vm3, %v817_v23, 0 }
 0x22b   : > { %831 = vmatpush.bf16.msra.mxu0 %v822_v24  ;;  %v689_v25 = vpack.c.bf16 %v687_v22, %v687_v22 }
 0x22d   : > { %1129 = vmatmul.msk.bf16.vlgmr.msrb.gmra.mxu1 %vm627_vm1, %v689_v25 }
 0x230   : > { %837 = vrot.lane.b32.xlu0 %v1328_v27, %s1222_s22 }
 0x28f   : > { %v806_v29 = vpop.xlane.xlu0 %805 }
 0x290   : > { %1191 = vrcp.f32 %v806_v29 }
 0x296   : > { %v1192_v30 = vpop.eup %1191 }
 0x297   : > { %v812_v31 = vmul.f32 %v1192_v30, %v1184_v12  ;;  %v809_v32 = vpop.xlane.xlu1 %808 }
 0x298   : > { %1193 = vrcp.f32 %v809_v32 }
 0x299   : > { %v814_v33 = vpack.c.bf16 %v812_v31, %v812_v31 }
 0x29b   : > { %1132 = vmatmul.msk.bf16.vlgmr.msra.gmra.mxu0 %vm627_vm1, %v814_v33 }
 0x29e   : > { %v1194_v34 = vpop.eup %1193 }
 0x29f   : > { %v813_v27 = vmul.f32 %v1194_v34, %v1188_v19 }
 0x2a1   : > { %v711_v35 = vpop.f32.mrf.mxu0  ;;  %v815_v38 = vpack.c.bf16 %v813_v27, %v813_v27 }
 0x2a2   : > { %v838_v36 = vpop.permute.xlu0 %837 }
 0x2a3   : > { %v843_v37 = vsel %vm698_vm3, %v838_v36, 0 }
 0x2a4   : > { %852 = vmatpush.bf16.msra.mxu1 %v843_v37 }
 0x2a7   : > { %1133 = vmatmul.msk.bf16.vlgmr.msra.gmra.mxu1 %vm627_vm1, %v815_v38 }
 0x2a9   : > { %v713_v39 = vpop.f32.mrf.mxu0 }
 0x2aa   : > { %v735_v40 = vpop.f32.mrf.mxu1 }
 0x2ab   : > { %v739_v41 = vpack.c.bf16 %v735_v40, %v711_v35 }
 0x2ad   : > { %1135 = vmatmul.msk.bf16.vlgmr.msra.gmra.mxu3 %vm627_vm1, %v739_v41 }
 0x2b2   : > { %v737_v42 = vpop.f32.mrf.mxu1 }
 0x318   : > { %v833_v45 = vpop.f32.mrf.mxu0 }
 0x320   : > { %v835_v46 = vpop.f32.mrf.mxu0 }
 0x324   : > { %v854_v47 = vpop.f32.mrf.mxu1 }
 0x325   : > { %v858_v48 = vpack.c.bf16 %v854_v47, %v833_v45 }
 0x327   : > { %1134 = vmatmul.msk.bf16.vlgmr.msra.gmra.mxu2 %vm627_vm1, %v858_v48 }
 0x32c   : > { %v856_v49 = vpop.f32.mrf.mxu1 }
 0x330   : > { %v894_v50 = vpop.f32.mrf.mxu3 }
 0x338   : > { %v896_v55 = vpop.f32.mrf.mxu3 }
 0x3aa   : > { %v874_v52 = vpop.f32.mrf.mxu2 }
 0x3ab   : > { %v895_v53 = vadd.f32 %v894_v50, %v874_v52 }
 0x3ad   : > { %v903_v54 = vadd.f32 %v1178_v51, %v895_v53 }
 0x3af   : > { %905 = vst.msk [vmem:[%s536_s15] sm:$0xff] %vm560_vm0, %v903_v54 }
 0x3b2   : > { %v876_v56 = vpop.f32.mrf.mxu2 }
 0x3b3   : > { %v897_v57 = vadd.f32 %v896_v55, %v876_v56 }
 0x3b5   : > { %v904_v58 = vadd.f32 %v1178_v51, %v897_v57 }
 0x3b7   : > { %906 = vst.msk [vmem:[%s536_s15 + $0x8] sm:$0xff] %vm560_vm0, %v904_v58 }
 0x3b8 PF: > { %s19_s11 = sadd.s32 1, %s1217_s11   ;;  %s1399_s30 = smov %s1213_s10 }
 0x3b9   : > { %p16_p5 = scmp.ge.s32.totalorder %s19_s11, 4   ;;  %s1400_s10 = smov %s1402_s12 }
 0x3bb   :  { %18 = sbr.rel (!%p16_p5) target bundleno = 2 (0x2), region = 110 }

</bundles_post_ra>
